<compile_context>
chip_gen: v7x
topology: tpu7x:2x2x1
jax: 0.10.0
libtpu: 0.0.40
codegen_flags: <defaults>
</compile_context>

<pallas_src>
import functools

import jax
import jax.numpy as jnp
from jax import lax
from jax.experimental import pallas as pl
from jax.experimental.pallas import tpu as pltpu


# ---------------------------------------------------------------------------
# Kernel A: mean cross-entropy + streaming statistics of target_dis.
# Accumulates sum(x) and X^T X directly into the (grid-resident) mu / cov
# outputs, then finalizes:
#   mu  = sum(x) / N
#   cov = (X^T X - N * mu^T mu) / (N - 1)        (ddof=1, matches torch.cov)
# ---------------------------------------------------------------------------
def _xe_stats_kernel(logits_ref, targets_ref, x_ref, xe_ref, mu_ref, cov_ref,
                     *, n_total):
    i = pl.program_id(0)

    @pl.when(i == 0)
    def _init():
        mu_ref[...] = jnp.zeros_like(mu_ref)
        cov_ref[...] = jnp.zeros_like(cov_ref)

        # ----- softmax cross entropy (mean over batch), stable LSE -----
        logits = logits_ref[...].astype(jnp.float32)             # [B, C]
        b, c = logits.shape
        m = jnp.max(logits, axis=-1, keepdims=True)
        lse = m + jnp.log(jnp.sum(jnp.exp(logits - m), axis=-1, keepdims=True))
        # Vectorized target gather: single broadcast compare against [B,1] col.
        cols = lax.broadcasted_iota(jnp.int32, (b, c), 1)
        tgt = targets_ref[...]                                   # [B, 1] int32
        tgt_logit = jnp.sum(jnp.where(cols == tgt, logits, 0.0),
                            axis=-1, keepdims=True)              # [B, 1]
        xe_ref[0] = jnp.sum(lse - tgt_logit) / b                 # scalar->SMEM

    # ----- streaming first / second moments of this row block -----
    x_raw = x_ref[...]                                           # [bn, D]
    x32 = x_raw.astype(jnp.float32)
    mu_ref[...] += jnp.sum(x32, axis=0, keepdims=True)           # running sum
    # X^T X: contract the sample axis directly (no explicit transpose copy);
    # native-dtype operands (bf16 OK) with f32 accumulation on the MXU.
    cov_ref[...] += lax.dot_general(
        x_raw, x_raw, (((0,), (0,)), ((), ())),
        preferred_element_type=jnp.float32)

    @pl.when(i == pl.num_programs(0) - 1)
    def _finalize():
        n = jnp.float32(n_total)
        mu = mu_ref[...] / n                                     # [1, D]
        mu_ref[...] = mu
        outer = lax.dot_general(                                 # mu^T mu [D,D]
            mu, mu, (((0,), (0,)), ((), ())),
            preferred_element_type=jnp.float32)
        cov_ref[...] = (cov_ref[...] - n * outer) / (n - 1.0)


def _pick_block_rows(n, d, max_bytes=4 << 20):
    """Largest row-block that divides N, is a multiple of 8, and keeps one
    (double-buffered) tile within a modest VMEM budget so the same choice is
    safe on v5e/v6e (128 MiB) and v7x (64 MiB physical)."""
    cap = max(8, min(n, max_bytes // max(1, d * 4)))
    if n <= cap:
        return n
    b = (cap // 8) * 8
    while b >= 8 and n % b != 0:
        b -= 8
    return b if b >= 8 else n


def xe_and_stats(logits, targets, target_dis):
    B, C = logits.shape
    N, D = target_dis.shape
    bn = _pick_block_rows(N, D)
    grid = (N // bn,)
    cost = pl.CostEstimate(
        flops=2 * N * D * D + 6 * B * C + 2 * D * D,
        transcendentals=B * C + B,
        bytes_accessed=(N * D + B * C + B + D * D + D + 1) * 4,
    )
    xe, mu, cov = pl.pallas_call(
        functools.partial(_xe_stats_kernel, n_total=N),
        out_shape=(
            jax.ShapeDtypeStruct((1,), jnp.float32),      # xe loss (SMEM)
            jax.ShapeDtypeStruct((1, D), jnp.float32),    # mu
            jax.ShapeDtypeStruct((D, D), jnp.float32),    # cov (ddof=1)
        ),
        grid=grid,
        in_specs=[
            pl.BlockSpec(memory_space=pltpu.MemorySpace.VMEM),   # logits
            pl.BlockSpec(memory_space=pltpu.MemorySpace.VMEM),   # targets [B,1]
            pl.BlockSpec((bn, D), lambda i: (i, 0)),             # target_dis
        ],
        out_specs=(
            pl.BlockSpec(memory_space=pltpu.MemorySpace.SMEM),
            pl.BlockSpec(memory_space=pltpu.MemorySpace.VMEM),
            pl.BlockSpec(memory_space=pltpu.MemorySpace.VMEM),
        ),
        compiler_params=pltpu.CompilerParams(
            dimension_semantics=("arbitrary",)),
        cost_estimate=cost,
    )(logits, targets.astype(jnp.int32).reshape(B, 1), target_dis)
    return xe[0], mu, cov


# ---------------------------------------------------------------------------
# Kernel B: regularization terms (after the DxD inverse).
#   out[0] = mean_distance     = (N-1)/N * sum(sigma_inv ⊙ cov)   (trace id.)
#   out[1] = mahalanobis_loss  = mean_j (wn_j - mu) S^-1 (wn_j - mu)^T,
#            wn = row-wise L2-normalized weights (torch: w / ||w||).
# ---------------------------------------------------------------------------
def _reg_kernel(w_ref, mu_ref, siginv_ref, cov_ref, out_ref, *, n_samples):
    w = w_ref[...].astype(jnp.float32)                            # [M, D]
    mu = mu_ref[...]                                              # [1, D]
    sig = siginv_ref[...]                                         # [D, D]
    m_rows = w.shape[0]

    # Row L2 normalization with EUP rsqrt (matches torch's bare division).
    ssq = jnp.sum(w * w, axis=-1, keepdims=True)                  # [M, 1]
    delta = w * lax.rsqrt(ssq) - mu                               # [M, D]

    # Single MXU pass for the weight quadratic form.
    t = jnp.dot(delta, sig, preferred_element_type=jnp.float32)   # [M, D]
    maha = jnp.sum(t * delta) / m_rows

    # mean_i d_i S^-1 d_i^T = (1/N) tr(S^-1 * sum_i d_i d_i^T)
    #                       = (N-1)/N * sum(S^-1 ⊙ cov)   (both symmetric);
    # no second pass over target_dis is needed.
    mean_dist = ((n_samples - 1.0) / n_samples) * jnp.sum(sig * cov_ref[...])

    out_ref[0] = mean_dist
    out_ref[1] = maha


def regularization_terms(weights, mu, sigma_inv, cov, n_samples):
    M, D = weights.shape
    cost = pl.CostEstimate(
        flops=2 * M * D * D + 8 * M * D + 2 * D * D,
        transcendentals=M,
        bytes_accessed=(M * D + 2 * D * D + D + 2) * 4,
    )
    out = pl.pallas_call(
        functools.partial(_reg_kernel, n_samples=float(n_samples)),
        out_shape=jax.ShapeDtypeStruct((2,), jnp.float32),
        in_specs=[pl.BlockSpec(memory_space=pltpu.MemorySpace.VMEM)] * 4,
        out_specs=pl.BlockSpec(memory_space=pltpu.MemorySpace.SMEM),
        cost_estimate=cost,
    )(weights, mu, sigma_inv, cov)
    return out[0], out[1]


# ---------------------------------------------------------------------------
# Full forward pass (equivalent to MahalanobisCriterion.forward)
# ---------------------------------------------------------------------------
def mahalanobis_criterion(outputs, targets, weights, target_dis,
                          regularization=True, division_power=3):
    xe_loss, mu, cov = xe_and_stats(outputs, targets, target_dis)
    if not regularization:
        return xe_loss

    # TODO(synk): the DxD matrix inverse has no Pallas primitive; it runs as
    # plain JAX between the two pallas_calls (for small D an in-kernel
    # Cholesky/solve would allow single-kernel fusion).
    sigma_inv = jnp.linalg.inv(cov)

    mean_distance, mahalanobis_loss = regularization_terms(
        weights, mu, sigma_inv, cov, target_dis.shape[0])

    mahalanobis_loss_scaled = (mahalanobis_loss - mean_distance) / (
        mean_distance ** division_power)
    total = xe_loss + jnp.abs(mahalanobis_loss_scaled)
    return total, xe_loss, mahalanobis_loss_scaled


if __name__ == "__main__":
    key = jax.random.PRNGKey(0)
    k1, k2, k3, k4 = jax.random.split(key, 4)

    B, C = 8, 8          # batch, num classes
    M, D = 8, 16         # num concepts (weight rows), feature dim
    N = 32               # target-distribution samples (N > D => invertible cov)

    outputs = jax.random.normal(k1, (B, C), dtype=jnp.float32)
    targets = jax.random.randint(k2, (B,), 0, C, dtype=jnp.int32)
    weights = jax.random.normal(k3, (M, D), dtype=jnp.float32)
    target_dis = jax.random.normal(k4, (N, D), dtype=jnp.float32)

    total, xe, scaled = mahalanobis_criterion(outputs, targets, weights,
                                              target_dis)
    jax.block_until_ready((total, xe, scaled))
    print("KERNEL_OK")
</pallas_src>

<mosaic_0001>
module attributes {stable_mosaic.version = 11 : i64} {
  func.func @_xe_stats_kernel(%arg0: i32, %arg1: memref<8x8xf32, #tpu.memory_space<vmem>>, %arg2: memref<8x1xi32, #tpu.memory_space<vmem>>, %arg3: memref<32x16xf32, #tpu.memory_space<vmem>>, %arg4: memref<1xf32, #tpu.memory_space<smem>>, %arg5: memref<1x16xf32, #tpu.memory_space<vmem>>, %arg6: memref<16x16xf32, #tpu.memory_space<vmem>>) attributes {dimension_semantics = [#tpu.dimension_semantics<arbitrary>], iteration_bounds = array<i64: 1>, scalar_prefetch = 0 : i64, scratch_operands = 0 : i64, tpu.core_type = #tpu.core_type<tc>, window_params = [{pipeline_mode = #tpu.pipeline_mode<synchronous>, transform_indices = @transform_0, window_bounds = array<i64: 8, 8>}, {pipeline_mode = #tpu.pipeline_mode<synchronous>, transform_indices = @transform_1, window_bounds = array<i64: 8, 1>}, {transform_indices = @transform_2, window_bounds = array<i64: 32, 16>}, {transform_indices = @transform_3, window_bounds = array<i64: 1>}, {pipeline_mode = #tpu.pipeline_mode<synchronous>, transform_indices = @transform_4, window_bounds = array<i64: 1, 16>}, {pipeline_mode = #tpu.pipeline_mode<synchronous>, transform_indices = @transform_5, window_bounds = array<i64: 16, 16>}]} {
    %c0_i32 = arith.constant 0 : i32
    %0 = arith.cmpi eq, %arg0, %c0_i32 : i32
    %1 = arith.extui %0 : i1 to i32
    %c0_i32_0 = arith.constant 0 : i32
    %2 = arith.cmpi ne, %1, %c0_i32_0 : i32
    scf.if %2 {
      %cst_13 = arith.constant 0.000000e+00 : f32
      %16 = vector.broadcast %cst_13 : f32 to vector<1x16xf32>
      %c0_14 = arith.constant 0 : index
      %c0_15 = arith.constant 0 : index
      %17 = vector.load %arg5[%c0_14, %c0_15] : memref<1x16xf32, #tpu.memory_space<vmem>>, vector<1x16xf32>
      tpu.vector_store %arg5[%c0_14, %c0_15], %16 {strides = array<i32>} : memref<1x16xf32, #tpu.memory_space<vmem>>, vector<1x16xf32>,
      %cst_16 = arith.constant 0.000000e+00 : f32
      %18 = vector.broadcast %cst_16 : f32 to vector<16x16xf32>
      %c0_17 = arith.constant 0 : index
      %c0_18 = arith.constant 0 : index
      %19 = vector.load %arg6[%c0_17, %c0_18] : memref<16x16xf32, #tpu.memory_space<vmem>>, vector<16x16xf32>
      tpu.vector_store %arg6[%c0_17, %c0_18], %18 {strides = array<i32>} : memref<16x16xf32, #tpu.memory_space<vmem>>, vector<16x16xf32>,
      %c0_19 = arith.constant 0 : index
      %c0_20 = arith.constant 0 : index
      %20 = vector.load %arg1[%c0_19, %c0_20] : memref<8x8xf32, #tpu.memory_space<vmem>>, vector<8x8xf32>
      %cst_21 = arith.constant dense<0xFF800000> : vector<8xf32>
      %21 = vector.multi_reduction <maximumf>, %20, %cst_21 [1] : vector<8x8xf32> to vector<8xf32>
      %22 = vector.shape_cast %21 : vector<8xf32> to vector<8x1xf32>
      %23 = vector.broadcast %22 : vector<8x1xf32> to vector<8x8xf32>
      %24 = arith.subf %20, %23 : vector<8x8xf32>
      %25 = math.exp %24 : vector<8x8xf32>
      %cst_22 = arith.constant dense<0.000000e+00> : vector<8xf32>
      %26 = vector.multi_reduction <add>, %25, %cst_22 [1] : vector<8x8xf32> to vector<8xf32>
      %27 = vector.shape_cast %26 : vector<8xf32> to vector<8x1xf32>
      %28 = math.log %27 : vector<8x1xf32>
      %29 = arith.addf %22, %28 : vector<8x1xf32>
      %30 = tpu.iota {dimensions = array<i32: 1>} : vector<8x8xi32>
      %c0_23 = arith.constant 0 : index
      %c0_24 = arith.constant 0 : index
      %31 = vector.load %arg2[%c0_23, %c0_24] : memref<8x1xi32, #tpu.memory_space<vmem>>, vector<8x1xi32>
      %32 = vector.broadcast %31 : vector<8x1xi32> to vector<8x8xi32>
      %33 = arith.cmpi eq, %30, %32 : vector<8x8xi32>
      %cst_25 = arith.constant 0.000000e+00 : f32
      %34 = vector.broadcast %cst_25 : f32 to vector<8x8xf32>
      %35 = arith.select %33, %20, %34 : vector<8x8xi1>, vector<8x8xf32>
      %cst_26 = arith.constant dense<0.000000e+00> : vector<8xf32>
      %36 = vector.multi_reduction <add>, %35, %cst_26 [1] : vector<8x8xf32> to vector<8xf32>
      %37 = vector.shape_cast %36 : vector<8xf32> to vector<8x1xf32>
      %38 = arith.subf %29, %37 : vector<8x1xf32>
      %39 = vector.shape_cast %38 : vector<8x1xf32> to vector<1x8x1xf32>
      %cst_27 = arith.constant dense<0.000000e+00> : vector<1xf32>
      %40 = vector.multi_reduction <add>, %39, %cst_27 [1, 2] : vector<1x8x1xf32> to vector<1xf32>
      %41 = vector.shape_cast %40 : vector<1xf32> to vector<1x1x1xf32>
      %42 = vector.extract %41[0, 0, 0] : f32 from vector<1x1x1xf32>
      %cst_28 = arith.constant 8.000000e+00 : f32
      %43 = arith.divf %42, %cst_28 : f32
      %c0_29 = arith.constant 0 : index
      %44 = memref.load %arg4[%c0_29] : memref<1xf32, #tpu.memory_space<smem>>
      memref.store %43, %arg4[%c0_29] : memref<1xf32, #tpu.memory_space<smem>>
    } else {
    }
    %c0 = arith.constant 0 : index
    %c0_1 = arith.constant 0 : index
    %3 = vector.load %arg3[%c0, %c0_1] : memref<32x16xf32, #tpu.memory_space<vmem>>, vector<32x16xf32>
    %c0_2 = arith.constant 0 : index
    %c0_3 = arith.constant 0 : index
    %4 = vector.load %arg5[%c0_2, %c0_3] : memref<1x16xf32, #tpu.memory_space<vmem>>, vector<1x16xf32>
    %cst = arith.constant dense<0.000000e+00> : vector<16xf32>
    %5 = vector.multi_reduction <add>, %3, %cst [0] : vector<32x16xf32> to vector<16xf32>
    %6 = vector.shape_cast %5 : vector<16xf32> to vector<1x16xf32>
    %7 = arith.addf %4, %6 : vector<1x16xf32>
    %c0_4 = arith.constant 0 : index
    %c0_5 = arith.constant 0 : index
    %8 = vector.load %arg5[%c0_4, %c0_5] : memref<1x16xf32, #tpu.memory_space<vmem>>, vector<1x16xf32>
    tpu.vector_store %arg5[%c0_4, %c0_5], %7 {strides = array<i32>} : memref<1x16xf32, #tpu.memory_space<vmem>>, vector<1x16xf32>,
    %c0_6 = arith.constant 0 : index
    %c0_7 = arith.constant 0 : index
    %9 = vector.load %arg6[%c0_6, %c0_7] : memref<16x16xf32, #tpu.memory_space<vmem>>, vector<16x16xf32>
    %cst_8 = arith.constant dense<0.000000e+00> : vector<16x16xf32>
    %10 = tpu.matmul %3, %3, %cst_8 {dimension_numbers = #tpu.dot_dimension_numbers<[0], [0], [1], [1], [0, 1, 1, 1], [], []>} : vector<32x16xf32>, vector<32x16xf32>, vector<16x16xf32> -> vector<16x16xf32>
    %11 = arith.addf %9, %10 : vector<16x16xf32>
    %c0_9 = arith.constant 0 : index
    %c0_10 = arith.constant 0 : index
    %12 = vector.load %arg6[%c0_9, %c0_10] : memref<16x16xf32, #tpu.memory_space<vmem>>, vector<16x16xf32>
    tpu.vector_store %arg6[%c0_9, %c0_10], %11 {strides = array<i32>} : memref<16x16xf32, #tpu.memory_space<vmem>>, vector<16x16xf32>,
    %c0_i32_11 = arith.constant 0 : i32
    %13 = arith.cmpi eq, %arg0, %c0_i32_11 : i32
    %14 = arith.extui %13 : i1 to i32
    %c0_i32_12 = arith.constant 0 : i32
    %15 = arith.cmpi ne, %14, %c0_i32_12 : i32
    scf.if %15 {
      %c0_13 = arith.constant 0 : index
      %c0_14 = arith.constant 0 : index
      %16 = vector.load %arg5[%c0_13, %c0_14] : memref<1x16xf32, #tpu.memory_space<vmem>>, vector<1x16xf32>
      %cst_15 = arith.constant 3.200000e+01 : f32
      %17 = vector.broadcast %cst_15 : f32 to vector<1x16xf32>
      %18 = arith.divf %16, %17 : vector<1x16xf32>
      %c0_16 = arith.constant 0 : index
      %c0_17 = arith.constant 0 : index
      %19 = vector.load %arg5[%c0_16, %c0_17] : memref<1x16xf32, #tpu.memory_space<vmem>>, vector<1x16xf32>
      tpu.vector_store %arg5[%c0_16, %c0_17], %18 {strides = array<i32>} : memref<1x16xf32, #tpu.memory_space<vmem>>, vector<1x16xf32>,
      %cst_18 = arith.constant dense<0.000000e+00> : vector<16x16xf32>
      %20 = tpu.matmul %18, %18, %cst_18 {dimension_numbers = #tpu.dot_dimension_numbers<[0], [0], [1], [1], [0, 1, 1, 1], [], []>} : vector<1x16xf32>, vector<1x16xf32>, vector<16x16xf32> -> vector<16x16xf32>
      %c0_19 = arith.constant 0 : index
      %c0_20 = arith.constant 0 : index
      %21 = vector.load %arg6[%c0_19, %c0_20] : memref<16x16xf32, #tpu.memory_space<vmem>>, vector<16x16xf32>
      %cst_21 = arith.constant 3.200000e+01 : f32
      %22 = vector.broadcast %cst_21 : f32 to vector<16x16xf32>
      %23 = arith.mulf %22, %20 : vector<16x16xf32>
      %24 = arith.subf %21, %23 : vector<16x16xf32>
      %cst_22 = arith.constant 3.200000e+01 : f32
      %cst_23 = arith.constant 1.000000e+00 : f32
      %25 = arith.subf %cst_22, %cst_23 : f32
      %26 = vector.broadcast %25 : f32 to vector<16x16xf32>
      %27 = arith.divf %24, %26 : vector<16x16xf32>
      %c0_24 = arith.constant 0 : index
      %c0_25 = arith.constant 0 : index
      %28 = vector.load %arg6[%c0_24, %c0_25] : memref<16x16xf32, #tpu.memory_space<vmem>>, vector<16x16xf32>
      tpu.vector_store %arg6[%c0_24, %c0_25], %27 {strides = array<i32>} : memref<16x16xf32, #tpu.memory_space<vmem>>, vector<16x16xf32>,
    } else {
    }
    return
  }
  func.func @transform_0(%arg0: i32) -> (i32, i32) {
    %c0_i32 = arith.constant 0 : i32
    %c0_i32_0 = arith.constant 0 : i32
    %c0_i32_1 = arith.constant 0 : i32
    return %c0_i32, %c0_i32_0 : i32, i32
  }
  func.func @transform_1(%arg0: i32) -> (i32, i32) {
    %c0_i32 = arith.constant 0 : i32
    %c0_i32_0 = arith.constant 0 : i32
    %c0_i32_1 = arith.constant 0 : i32
    return %c0_i32, %c0_i32_0 : i32, i32
  }
  func.func @transform_2(%arg0: i32) -> (i32, i32) {
    %c0_i32 = arith.constant 0 : i32
    %c0_i32_0 = arith.constant 0 : i32
    return %arg0, %c0_i32 : i32, i32
  }
  func.func @transform_3(%arg0: i32) -> i32 {
    %c0_i32 = arith.constant 0 : i32
    %c0_i32_0 = arith.constant 0 : i32
    return %c0_i32 : i32
  }
  func.func @transform_4(%arg0: i32) -> (i32, i32) {
    %c0_i32 = arith.constant 0 : i32
    %c0_i32_0 = arith.constant 0 : i32
    %c0_i32_1 = arith.constant 0 : i32
    return %c0_i32, %c0_i32_0 : i32, i32
  }
  func.func @transform_5(%arg0: i32) -> (i32, i32) {
    %c0_i32 = arith.constant 0 : i32
    %c0_i32_0 = arith.constant 0 : i32
    %c0_i32_1 = arith.constant 0 : i32
    return %c0_i32, %c0_i32_0 : i32, i32
  }
}

</mosaic_0001>

<bundles_post_ra>
// kernel: tpu_custom_call.1
= control target key start
LH: loop header
LB: loop body
LE: loop exit
PB: predicated region body
PF: predicated region fallthrough
CT: control target
= control target key end

     0   :  { %11 = vsyncpa [#allocation4], 0  ;;  %s616_s0 = inlined_call_operand.vmem [shape: f32[8,8], index: 0, kind: input, shape index: {}]   ;;  %s617_s1 = inlined_call_operand.vmem [shape: s32[8,1], index: 1, kind: input, shape index: {}]   ;;  %s618_s2 = inlined_call_operand.vmem [shape: f32[32,16], index: 2, kind: input, shape index: {}]   ;;  %s619_s3 = inlined_call_operand.hbm [shape: f32[1], index: 3, kind: output, shape index: {0}]   ;;  %s620_s4 = inlined_call_operand.hbm [shape: f32[1,16], index: 4, kind: output, shape index: {1}]   ;;  %s621_s5 = inlined_call_operand.hbm [shape: f32[16,16], index: 5, kind: output, shape index: {2}]  }
   0x1   :  { %12 = vsyncpa [#allocation3], 0  ;;  %v544_v0 = vld [vmem:[%s616_s0] sm:$0xff]  ;;  %vm30_vm0 = vcmask 64512   ;;  %vm26_vm1 = vcmask 130048   ;;  %v504_v3 = vmov 0  }
   0x2   :  { %v71_v1 = vld [vmem:[%s618_s2] sm:$0xff]  ;;  %v31_v2 = vsel %vm30_vm0, %v544_v0, -inf  ;;  %439 = vset.pattern.permute.xlu0 %v504_v3  ;;  %v72_v5 = vld [vmem:[%s618_s2 + $0x8] sm:$0xff]  ;;  %v73_v6 = vld [vmem:[%s618_s2 + $0x10] sm:$0xff]  ;;  %vm24_vm2 = vcmask 122880  }
   0x3   :  { %95 = vxpose.xlu1.b32.start [1/4] (short) (narrow) %v71_v1, 16  ;;  %v77_v4 = vsel %vm26_vm1, %v71_v1, 0.0  ;;  %v74_v7 = vld [vmem:[%s618_s2 + $0x18] sm:$0xff]  ;;  %32 = vmax.xlane.f32.xlu0 %v31_v2  ;;  %v78_v8 = vsel %vm26_vm1, %v72_v5, 0.0  ;;  %v80_v9 = vsel %vm26_vm1, %v73_v6, 0.0 }
   0x4   :  { %13 = vsyncpa [#allocation7], 0  ;;  %v79_v10 = vadd.f32 %v78_v8, %v77_v4  ;;  %v505_v11 = vmov 0.0   ;;  %v82_v12 = vsel %vm26_vm1, %v74_v7, 0.0  ;;  %v45_v22 = vld [vmem:[%s617_s1] sm:$0xff]  ;;  %v422_v26 = vpack.c.bf16 %v72_v5, %v71_v1  ;;  %s506_s1 = smov [#allocation5]  }
   0x5   :  { %25 = vst.msk [vmem:[#allocation5] sm:$0x1] %vm24_vm2, %v505_v11  ;;  %v426_v27 = vpack.c.bf16 %v74_v7, %v73_v6  ;;  %vm259_vm3 = vcmask 1040384   ;;  %vm127_vm4 = vcmask 261120   ;;  %v43_v32 = vlaneseq  ;;  %s363_s28 = sshll.u32 %s506_s1, 4  ;;  %s507_s29 = smov [#allocation6]   ;;  %s364_s28 = int_to_ptr.vmem [resolvable:$true] %s363_s28 }
   0x6   :  { %27 = vst.msk [vmem:[#allocation6] sm:$0xff] %vm26_vm1, %v505_v11  ;;  %28 = vst.msk [vmem:[#allocation6 + $0x8] sm:$0xff] %vm26_vm1, %v505_v11  ;;  %v81_v13 = vadd.f32 %v80_v9, %v79_v10  ;;  %423 = vmatprep.subr.bf16.mxu0 %v422_v26  ;;  %vm55_vm6 = vcmask 7168   ;;  %s372_s30 = sshll.u32 %s507_s29, 4  ;;  %s444_s6 = scalar_lea.vmem %s364_s28, 16  ;;  %s373_s30 = int_to_ptr.vmem [resolvable:$true] %s372_s30 }
   0x7   :  { %96 = vxpose.xlu1.b32.cont [2/4] (short) (narrow) %v72_v5, 16  ;;  %425 = vmatpush3.bf16.msra.mxu0 %v422_v26  ;;  %v44_v34 = vand.u32 127, %v43_v32  ;;  %p445_p0 = scmp.ne.s32.totalorder %s364_s28, %s444_s6  ;;  %s448_s7 = scalar_lea.vmem %s364_s28, 32 }
   0x8   :  { %v83_v14 = vadd.f32 %v82_v12, %v81_v13  ;;  %427 = vmatprep.subr.bf16.mxu0 %v426_v27  ;;  %p449_p1 = scmp.lt.s32.totalorder %s364_s28, %s364_s28  ;;  %p450_p2 = scmp.lt.s32.totalorder %s448_s7, %s444_s6 }
   0xa   :  { %v84_v15 = vrot.slane %v83_v14, 4  ;;  %p451_p3 = por %p450_p2, %p449_p1 }
   0xb   :  { %97 = vxpose.xlu1.b32.cont [3/4] (short) (narrow) %v73_v6, 16  ;;  %429 = vmatpush3.bf16.msra.mxu0 %v426_v27 }
   0xc   :  { %v85_v16 = vadd.f32 %v84_v15, %v83_v14  ;;  %v75_v20 = vld [vmem:[#allocation5] sm:$0x1]  ;;  %p452_p4 = pnand %p451_p3, %p445_p0 }
   0xd   :  { %v94_v49 = vld [vmem:[#allocation6 + $0x8] sm:$0xff]  ;;  %v93_v51 = vld [vmem:[#allocation6] sm:$0xff] }
   0xe   :  { %v86_v17 = vrot.slane %v85_v16, 2 }
   0xf   :  { %98 = vxpose.xlu1.b32.end [4/4] (short) (narrow) %v74_v7, 16 }
  0x10   :  { %v87_v18 = vadd.f32 %v86_v17, %v85_v16 }
  0x12   :  { %v88_v19 = vrot.slane %v87_v18, 1 }
  0x14   :  { %v89_v21 = vadd.f32 %v88_v19, %v87_v18 }
  0x16   :  { %v90_v23 = vadd.f32 %v89_v21, %v75_v20 }
  0x18   :  { %92 = vst.msk [vmem:[#allocation5] sm:$0x1] %vm24_vm2, %v90_v23 }
  0x19   :  { %47 = vperm.xlu0 %439, %v45_v22  }
  0x1f   :  { %v216_v24 = vld [vmem:[#allocation5] sm:$0x1] }
  0x20   :  { %v218_v25 = vmul.f32 0.03125, %v216_v24 }
  0x22   :  { %220 = vxpose.xlu1.b32.start.end [1/1] (short) (narrow) %v218_v25, 16  ;;  %219 = vst.msk [vmem:[#allocation5] sm:$0x1] %vm24_vm2, %v218_v25  ;;  %417 = vmatprep.subr.msk.mxu1 %vm259_vm3, %v218_v25 }
  0x23   :  { %418 = vmatpush3.msk.msra.mxu1 %vm259_vm3, %v218_v25 }
  0x83   :  { %v111_v28 = vpop.trf.xlu1 }
  0x84   :  { %414 = vmatprep.mubr.msk.f32.mxu0 %vm127_vm4, %v111_v28 }
  0x87   :  { %v112_v29 = vpop.trf.xlu1 }
  0x88   :  { %415 = vmatmul.mubr.msk.f32.vlgmr.msra.gmra.mrb[0].mxu0 %vm127_vm4, %v112_v29 }
  0x90   :  { %v33_v30 = vpop.xlane.xlu0 %32 }
  0x91   :  { %v34_v31 = vsub.f32 %v544_v0, %v33_v30 }
  0x93   :  { %v35_v33 = vmul.f32 1.442695, %v34_v31 }
  0x95   :  { %440 = vpow2.f32 %v35_v33 }
  0x98   :  { %v48_v35 = vpop.permute.xlu0 %47 }
  0x99   :  { %vm49_vm5 = vcmp.eq.s32.totalorder %v44_v34, %v48_v35 }
  0x9a   :  { %v50_v36 = vsel %vm49_vm5, %v544_v0, 0.0 }
  0x9b   :  { %v51_v37 = vsel %vm30_vm0, %v50_v36, 0.0 }
  0x9c   :  { %52 = vadd.xlane.f32.xlu0 %v51_v37 }
  0x9f   :  { %v441_v38 = vpop.eup %440 }
  0xa0   :  { %v37_v39 = vsel %vm30_vm0, %v441_v38, 0.0 }
  0xa1   :  { %38 = vadd.xlane.f32.xlu1 %v37_v39 }
  0xa2   :  { %v236_v40 = vpop.trf.xlu1 }
  0xa3   :  { %419 = vmatprep.mubr.msk.f32.mxu1 %vm55_vm6, %v236_v40 }
  0xa6   :  { %v237_v41 = vpop.trf.xlu1 }
  0xa7   :  { %420 = vmatmul.mubr.msk.f32.vlgmr.msra.gmra.mrb[0].mxu1 %vm55_vm6, %v237_v41 }
 0x129   :  { %v53_v45 = vpop.xlane.xlu0 %52 }
 0x12e   :  { %v39_v42 = vpop.xlane.xlu1 %38 }
 0x12f   :  { %442 = vlog2.f32 %v39_v42 }
 0x139   :  { %v443_v43 = vpop.eup %442 }
 0x13a   :  { %v41_v44 = vmul.f32 0.6931472, %v443_v43 }
 0x13c   :  { %v42_v46 = vadd.f32 %v41_v44, %v33_v30 }
 0x13e   :  { %v54_v47 = vsub.f32 %v42_v46, %v53_v45 }
 0x140   :  { %v56_v48 = vsel %vm55_vm6, %v54_v47, 0.0 }
 0x141   :  { %57 = vadd.xlane.f32.xlu1 %v56_v48 }
 0x15b   :  { %v416_v50 = vpop.f32.mrb[0].mxu0 }
 0x15c   :  { %v210_v52 = vadd.f32 %v416_v50, %v94_v49  ;;  %v200_v53 = vpop.f32.mrb[1].mxu0 }
 0x15d   :  { %v209_v54 = vadd.f32 %v200_v53, %v93_v51 }
 0x15e   :  { %212 = vst.msk [vmem:[#allocation6 + $0x8] sm:$0xff] %vm26_vm1, %v210_v52 }
 0x15f   :  { %211 = vst.msk [vmem:[#allocation6] sm:$0xff] %vm26_vm1, %v209_v54 }
 0x165   :  { %v339_v56 = vld [vmem:[#allocation6 + $0x8] sm:$0xff] }
 0x166   :  { %v338_v59 = vld [vmem:[#allocation6] sm:$0xff] }
 0x17a   :  { %v421_v55 = vpop.f32.mrb[0].mxu1 }
 0x17b   :  { %v341_v57 = vmul.f32 32.0, %v421_v55  ;;  %v329_v58 = vpop.f32.mrb[1].mxu1 }
 0x17c   :  { %v340_v60 = vmul.f32 32.0, %v329_v58 }
 0x17d   :  { %v343_v61 = vsub.f32 %v339_v56, %v341_v57 }
 0x17e   :  { %v342_v62 = vsub.f32 %v338_v59, %v340_v60 }
 0x17f   :  { %v346_v63 = vmul.f32 0.032258064, %v343_v61 }
 0x180   :  { %v345_v0 = vmul.f32 0.032258064, %v342_v62 }
 0x181   :  { %348 = vst.msk [vmem:[#allocation6 + $0x8] sm:$0xff] %vm26_vm1, %v346_v63 }
 0x182   :  { %347 = vst.msk [vmem:[#allocation6] sm:$0xff] %vm26_vm1, %v345_v0 }
 0x183   :  { %455 = shalt.err (!%p452_p4)
}
 0x184   :  { %s456_s10 = scalar_lea.hbm %s620_s4, 16 }
 0x185   :  { %p457_p5 = scmp.ne.s32.totalorder %s620_s4, %s456_s10  ;;  %p460_p6 = scmp.lt.u32.totalorder %s456_s10, %s620_s4 }
 0x187   :  { %p462_p7 = pnand %p460_p6, %p457_p5 }
 0x189   :  { %465 = shalt.err (!%p462_p7)
}
 0x18a   :  { %366 = dma.vmem_to_hbm [thread:$0]  %s364_s28, 16, %s620_s4, [#allocation3]  }
 0x18b   :  { %s466_s17 = scalar_lea.vmem %s373_s30, 256  ;;  %p471_p9 = scmp.lt.s32.totalorder %s373_s30, %s373_s30 }
 0x18c   :  { %p467_p8 = scmp.ne.s32.totalorder %s373_s30, %s466_s17  ;;  %p472_p10 = scmp.lt.s32.totalorder %s466_s17, %s466_s17 }
 0x18e   :  { %p473_p11 = por %p472_p10, %p471_p9 }
 0x190   :  { %p474_p12 = pnand %p473_p11, %p467_p8 }
 0x192   :  { %477 = shalt.err (!%p474_p12)
}
 0x193   :  { %s478_s20 = scalar_lea.hbm %s621_s5, 256 }
 0x194   :  { %p479_p13 = scmp.ne.s32.totalorder %s621_s5, %s478_s20  ;;  %p482_p0 = scmp.lt.u32.totalorder %s478_s20, %s621_s5 }
 0x196   :  { %p484_p1 = pnand %p482_p0, %p479_p13 }
 0x198   :  { %487 = shalt.err (!%p484_p1)
}
 0x199   :  { %s508_s4 = smov 128   ;;  %s509_s24 = smov 8  }
 0x19a   :  { %378 = dma.vmem_to_hbm [thread:$0]  %s373_s30, 256, %s621_s5, [#allocation7], %s508_s4, %s508_s4, %s509_s24  }
 0x19b   :  { %s488_s29 = scalar_lea.hbm %s619_s3, 16 }
 0x19c   :  { %p489_p2 = scmp.ne.s32.totalorder %s619_s3, %s488_s29  ;;  %p492_p3 = scmp.lt.u32.totalorder %s488_s29, %s619_s3 }
 0x19e   :  { %p494_p4 = pnand %p492_p3, %p489_p2 }
 0x1ce   :  { %v58_v1 = vpop.xlane.xlu1 %57 }
 0x1cf   :  { %v59_v2 = vrot.slane %v58_v1, 4 }
 0x1d1   :  { %v60_v3 = vadd.f32 %v59_v2, %v58_v1 }
 0x1d3   :  { %v61_v4 = vrot.slane %v60_v3, 2 }
 0x1d5   :  { %v62_v5 = vadd.f32 %v61_v4, %v60_v3 }
 0x1d7   :  { %v63_v6 = vrot.slane %v62_v5, 1 }
 0x1d9   :  { %v64_v7 = vadd.f32 %v63_v6, %v62_v5 }
 0x1db   :  { %430 = vpush %v64_v7 }
 0x20c   :  { %s431_s2 = spop %430 }
 0x20d   :  { %s68_s27 = smul.f32 0.125, %s431_s2 }
 0x20f   :  { %70 = sst [smem:[#allocation2]] %s68_s27 }
 0x210   :  { %497 = shalt.err (!%p494_p4)
}
 0x211   :  { %s510_s8 = smov [#allocation2]  }
 0x212   :  { %356 = dma.smem_to_hbm %s510_s8, 16, %s619_s3, [#allocation4]  }
 0x213   :  { %498 = dma.done.wait [#allocation4], 16  }
 0x214   :  { %499 = vsyncadd [#allocation4], 4294967280 }
 0x215   :  { %500 = dma.done.wait [#allocation3], 16  }
 0x216   :  { %501 = vsyncadd [#allocation3], 4294967280 }
 0x217   :  { %502 = dma.done.wait [#allocation7], 256  }
 0x218   :  { %503 = vsyncadd [#allocation7], 4294967040 }
 0x219   :  { %388 = sfence }
 0x21a   :  { %389 = vsyncpa [#allocation3], 1 }
 0x21b   :  { %390 = vsyncpa [#allocation7], 1 }
 0x21c   :  { %391 = vsyncpa [#allocation4], 1 }

</bundles_post_ra>
